<compile_context>
chip_gen: v7x
topology: tpu7x:2x2x1
jax: 0.10.0
libtpu: 0.0.40
codegen_flags: <defaults>
</compile_context>

<pallas_src>
import numpy as np
import jax
import jax.numpy as jnp
from jax.experimental import pallas as pl
from jax.experimental.pallas import tpu as pltpu


def _addbias_kernel(bias_ref, out_ref):
    # forward(): return self.bias  -> identity copy of the parameter tile.
    # (With input_output_aliases, in/out refer to the same buffer; the write
    # is a no-op data-wise but keeps the kernel well-formed.)
    out_ref[...] = bias_ref[...]


def add_bias_forward(bias: jax.Array) -> jax.Array:
    """Pallas implementation of AddBias.forward(): returns the bias parameter.

    Single kernel invocation (no grid), whole array resident in VMEM, output
    aliased to the input so XLA does not allocate / copy a second HBM buffer.
    """
    return pl.pallas_call(
        _addbias_kernel,
        out_shape=jax.ShapeDtypeStruct(bias.shape, bias.dtype),
        in_specs=[pl.BlockSpec(memory_space=pltpu.MemorySpace.VMEM)],
        out_specs=pl.BlockSpec(memory_space=pltpu.MemorySpace.VMEM),
        input_output_aliases={0: 0},
    )(bias)
    # TODO(synk): if a large (>~10 MiB) bias variant is ever needed, tile with a
    # grid of >=512-wide lane-dense blocks and set vmem_limit_bytes for v7x.


class AddBias:
    """JAX/Pallas counterpart of the PyTorch AddBias module."""

    def __init__(self, shape):
        # nn.Parameter(torch.zeros(*shape).float()) -> deterministic zero init.
        self.bias = jnp.zeros(shape, dtype=jnp.float32)

    def __call__(self):
        # forward() just returns the parameter — no kernel launch needed
        # (highest-value optimization: skip the copy entirely).
        return self.bias


if __name__ == "__main__":
    key = jax.random.PRNGKey(0)
    shape = (8, 128)  # lane-dense: last dim multiple of 128

    # 1) Exact module semantics: zero-initialized bias, forward returns it.
    mod = AddBias(shape)
    out = jax.block_until_ready(mod())
    assert out.shape == shape and out.dtype == jnp.float32
    assert bool(jnp.all(out == 0.0))

    # 2) Run the Pallas kernel path once and check it numerically with a
    #    random-valued bias.  Snapshot the expected value to host first since
    #    the kernel output aliases its input buffer.
    rand_bias = jax.random.normal(key, shape, dtype=jnp.float32)
    expected = np.asarray(rand_bias)
    out_rand = jax.block_until_ready(add_bias_forward(rand_bias))
    assert out_rand.shape == shape and out_rand.dtype == jnp.float32
    assert np.allclose(np.asarray(out_rand), expected)

    print("KERNEL_OK")
</pallas_src>

<mosaic_0001>
module attributes {stable_mosaic.version = 11 : i64} {
  func.func @_addbias_kernel(%arg0: memref<8x128xf32, #tpu.memory_space<vmem>>, %arg1: memref<8x128xf32, #tpu.memory_space<vmem>>) attributes {dimension_semantics = [], scalar_prefetch = 0 : i64, scratch_operands = 0 : i64, tpu.core_type = #tpu.core_type<tc>} {
    %c0 = arith.constant 0 : index
    %c0_0 = arith.constant 0 : index
    %0 = vector.load %arg0[%c0, %c0_0] : memref<8x128xf32, #tpu.memory_space<vmem>>, vector<8x128xf32>
    %c0_1 = arith.constant 0 : index
    %c0_2 = arith.constant 0 : index
    %1 = vector.load %arg1[%c0_1, %c0_2] : memref<8x128xf32, #tpu.memory_space<vmem>>, vector<8x128xf32>
    tpu.vector_store %arg1[%c0_1, %c0_2], %0 {strides = array<i32>} : memref<8x128xf32, #tpu.memory_space<vmem>>, vector<8x128xf32>,
    return
  }
}

</mosaic_0001>

<bundles_post_ra>
// kernel: tpu_custom_call.1
= control target key start
LH: loop header
LB: loop body
LE: loop exit
PB: predicated region body
PF: predicated region fallthrough
CT: control target
= control target key end

     0   :  { %6 = vsyncpa [#allocation3], 0  ;;  %s124_s0 = inlined_call_operand.hbm [shape: f32[8,128], index: 0, kind: input, shape index: {}, may-alias: {0,1}]   ;;  %s125_s1 = inlined_call_operand.hbm [shape: f32[8,128], index: 1, kind: output, shape index: {}, may-alias: {0,1}]  }
   0x1   :  { %7 = vsyncpa [#allocation4], 0  ;;  %s88_s6 = smov [#allocation2]   ;;  %s40_s10 = scalar_lea.hbm %s124_s0, 128 }
   0x2   :  { %s14_s7 = sshll.u32 %s88_s6, 4  ;;  %p41_p0 = scmp.ne.s32.totalorder %s124_s0, %s40_s10  ;;  %s15_s7 = int_to_ptr.vmem [resolvable:$true] %s14_s7 }
   0x3   :  { %p44_p1 = scmp.lt.u32.totalorder %s40_s10, %s124_s0 }
   0x5   :  { %p46_p2 = pnand %p44_p1, %p41_p0 }
   0x7   :  { %49 = shalt.err (!%p46_p2)
}
   0x8   :  { %s50_s15 = scalar_lea.vmem %s15_s7, 128  ;;  %p55_p4 = scmp.lt.s32.totalorder %s15_s7, %s15_s7 }
   0x9   :  { %p51_p3 = scmp.ne.s32.totalorder %s15_s7, %s50_s15  ;;  %p56_p5 = scmp.lt.s32.totalorder %s50_s15, %s50_s15 }
   0xb   :  { %p57_p6 = por %p56_p5, %p55_p4 }
   0xd   :  { %p58_p7 = pnand %p57_p6, %p51_p3 }
   0xf   :  { %61 = shalt.err (!%p58_p7)
}
  0x10   :  { %17 = dma.hbm_to_vmem [thread:$0]  %s124_s0, 128, %s15_s7, [#allocation3]  }
  0x11   :  { %84 = dma.done.wait [#allocation3], 128  }
  0x12   :  { %85 = vsyncadd [#allocation3], 4294967168  ;;  %s89_s18 = smov [#allocation5]   ;;  %v21_v0 = vld [vmem:[#allocation2] sm:$0xff] }
  0x13   :  { %s29_s19 = sshll.u32 %s89_s18, 4  ;;  %22 = vst [vmem:[#allocation5] sm:$0xff] %v21_v0  ;;  %s30_s19 = int_to_ptr.vmem [resolvable:$true] %s29_s19 }
  0x14   :  { %s62_s20 = scalar_lea.vmem %s30_s19, 128  ;;  %p67_p9 = scmp.lt.s32.totalorder %s30_s19, %s30_s19 }
  0x15   :  { %p63_p8 = scmp.ne.s32.totalorder %s30_s19, %s62_s20  ;;  %p68_p10 = scmp.lt.s32.totalorder %s62_s20, %s62_s20 }
  0x17   :  { %p69_p11 = por %p68_p10, %p67_p9 }
  0x19   :  { %p70_p12 = pnand %p69_p11, %p63_p8 }
  0x1b   :  { %73 = shalt.err (!%p70_p12)
}
  0x1c   :  { %s74_s23 = scalar_lea.hbm %s125_s1, 128 }
  0x1d   :  { %p75_p13 = scmp.ne.s32.totalorder %s125_s1, %s74_s23  ;;  %p78_p0 = scmp.lt.u32.totalorder %s74_s23, %s125_s1 }
  0x1f   :  { %p80_p1 = pnand %p78_p0, %p75_p13 }
  0x21   :  { %83 = shalt.err (!%p80_p1)
}
  0x22   :  { %32 = dma.vmem_to_hbm [thread:$0]  %s30_s19, 128, %s125_s1, [#allocation4]  }
  0x23   :  { %86 = dma.done.wait [#allocation4], 128  }
  0x24   :  { %87 = vsyncadd [#allocation4], 4294967168 }
  0x25   :  { %36 = vsyncpa [#allocation3], 1 }
  0x26   :  { %37 = vsyncpa [#allocation4], 1 }

</bundles_post_ra>
